<compile_context>
chip_gen: v6e
topology: v6e:2x2x1
jax: 0.10.0
libtpu: 0.0.40
codegen_flags: <defaults>
</compile_context>

<pallas_src>
import functools

import jax
import jax.numpy as jnp
from jax.experimental import pallas as pl
from jax.experimental.pallas import tpu as pltpu


def _silu(v):
    return v * jax.nn.sigmoid(v)


def _round_up(n, m):
    return ((n + m - 1) // m) * m


def concat_squash_kernel(
    x_ref, ctx_ref,
    wxs_ref, bxs_ref,      # fused [layer | skip]            : (dim_in , 2*dim_out), (1, 2*dim_out)
    wc_ref, bc_ref,        # self._layer_ctx Linear          : (ctx_dim,   dim_out), (1,   dim_out)
    wgb_ref, bgb_ref,      # fused [hyper_gate | hyper_bias] : (dim_out, 2*dim_out), (1, 2*dim_out)
    out_ref,
    *, dim_out,
):
    x = x_ref[...].astype(jnp.float32)
    ctx = ctx_ref[...].astype(jnp.float32)

    # ---- ctx path: SiLU -> Linear -> SiLU -> fused (gate | bias) matmul ----
    # TODO(synk): if the caller broadcasts one ctx row over many x rows, this
    # path could be hoisted out of the per-row kernel and computed once.
    c = _silu(ctx)
    h = _silu(
        jnp.dot(c, wc_ref[...].astype(jnp.float32),
                preferred_element_type=jnp.float32)
        + bc_ref[...].astype(jnp.float32)
    )
    gb = (
        jnp.dot(h, wgb_ref[...].astype(jnp.float32),
                preferred_element_type=jnp.float32)
        + bgb_ref[...].astype(jnp.float32)
    )
    gate = jax.nn.sigmoid(gb[:, :dim_out])
    bias = gb[:, dim_out:]

    # ---- x path: fused (layer | skip) matmul ----
    xs = (
        jnp.dot(x, wxs_ref[...].astype(jnp.float32),
                preferred_element_type=jnp.float32)
        + bxs_ref[...].astype(jnp.float32)
    )
    lay = xs[:, :dim_out]
    skip = xs[:, dim_out:]

    # ret = layer(x) * gate + bias ; return ret + skip(x)
    out_ref[...] = (lay * gate + bias + skip).astype(out_ref.dtype)


def concat_squash_linear_skip_ctx(ctx, x, params, *, tb=1024):
    """Pallas implementation of ConcatSquashLinearSkipCtx.forward(ctx, x).

    ctx : (B, ctx_dim) row-aligned with x
    x   : (B, dim_in)
    """
    B, dim_in = x.shape
    Bc, ctx_dim = ctx.shape
    assert Bc == B, "ctx must be row-aligned with x"
    dim_out = params["wl"].shape[1]

    # Effective batch tile: as large as requested but never larger than the
    # (8-aligned) batch; then pad the batch to a multiple of the tile.
    tb_eff = min(tb, _round_up(B, 8))
    B_pad = _round_up(B, tb_eff)
    if B_pad != B:
        x = jnp.pad(x, ((0, B_pad - B), (0, 0)))
        ctx = jnp.pad(ctx, ((0, B_pad - B), (0, 0)))

    # Host-side weight fusion (lane-dense 2*dim_out results in-kernel).
    w_xs = jnp.concatenate([params["wl"], params["ws"]], axis=1)   # (dim_in , 2*dim_out)
    b_xs = jnp.concatenate([params["bl"], params["bs"]], axis=1)   # (1      , 2*dim_out)
    w_gb = jnp.concatenate([params["wg"], params["wb"]], axis=1)   # (dim_out, 2*dim_out)
    b_gb = jnp.concatenate(
        [params["bg"], jnp.zeros_like(params["bg"])], axis=1       # hyper_bias has no bias
    )

    grid = (B_pad // tb_eff,)

    def row_spec(feat):
        return pl.BlockSpec((tb_eff, feat), lambda i: (i, 0))

    def full_spec(shape):
        return pl.BlockSpec(shape, lambda i: (0, 0))

    in_specs = [
        row_spec(dim_in),                          # x
        row_spec(ctx_dim),                         # ctx
        full_spec((dim_in, 2 * dim_out)),          # w_xs
        full_spec((1, 2 * dim_out)),               # b_xs
        full_spec((ctx_dim, dim_out)),             # wc
        full_spec((1, dim_out)),                   # bc
        full_spec((dim_out, 2 * dim_out)),         # w_gb
        full_spec((1, 2 * dim_out)),               # b_gb
    ]

    itemsize = jnp.dtype(x.dtype).itemsize
    mm_flops = dim_in * 2 * dim_out + ctx_dim * dim_out + dim_out * 2 * dim_out
    cost = pl.CostEstimate(
        flops=2 * B_pad * mm_flops,
        transcendentals=B_pad * (ctx_dim + 2 * dim_out),
        bytes_accessed=(
            B_pad * (dim_in + ctx_dim + dim_out) * itemsize
            + 4 * (mm_flops + 5 * dim_out)
        ),
    )

    out = pl.pallas_call(
        functools.partial(concat_squash_kernel, dim_out=dim_out),
        out_shape=jax.ShapeDtypeStruct((B_pad, dim_out), x.dtype),
        grid_spec=pltpu.PrefetchScalarGridSpec(
            num_scalar_prefetch=0,
            grid=grid,
            in_specs=in_specs,
            out_specs=row_spec(dim_out),
        ),
        compiler_params=pltpu.CompilerParams(
            dimension_semantics=("parallel",),
        ),
        cost_estimate=cost,
    )(x, ctx, w_xs, b_xs, params["wc"], params["bc"], w_gb, b_gb)

    return out[:B] if B_pad != B else out


def reference_forward(ctx, x, params):
    """Pure-JAX reference mirroring the PyTorch forward semantics."""
    c = _silu(ctx)
    h = _silu(c @ params["wc"] + params["bc"])
    gate = jax.nn.sigmoid(h @ params["wg"] + params["bg"])
    bias = h @ params["wb"]
    ret = (x @ params["wl"] + params["bl"]) * gate + bias
    return ret + (x @ params["ws"] + params["bs"])


def init_params(key, dim_in, dim_out, ctx_dim, dtype=jnp.float32):
    ks = jax.random.split(key, 9)
    scale = 0.1
    return {
        "wl": scale * jax.random.normal(ks[0], (dim_in, dim_out), dtype),
        "bl": scale * jax.random.normal(ks[1], (1, dim_out), dtype),
        "wc": scale * jax.random.normal(ks[2], (ctx_dim, dim_out), dtype),
        "bc": scale * jax.random.normal(ks[3], (1, dim_out), dtype),
        "wg": scale * jax.random.normal(ks[4], (dim_out, dim_out), dtype),
        "bg": scale * jax.random.normal(ks[5], (1, dim_out), dtype),
        "wb": scale * jax.random.normal(ks[6], (dim_out, dim_out), dtype),
        "ws": scale * jax.random.normal(ks[7], (dim_in, dim_out), dtype),
        "bs": scale * jax.random.normal(ks[8], (1, dim_out), dtype),
    }


if __name__ == "__main__":
    # Small shapes consistent with the module:
    #   dim_in=32, dim_out=64, nxemb=16, ntemb=16  -> ctx_dim = nxemb + ntemb = 32
    dim_in, dim_out = 32, 64
    nxemb, ntemb = 16, 16
    ctx_dim = nxemb + ntemb

    key = jax.random.PRNGKey(0)
    k_x, k_ctx, k_p, k_x2, k_ctx2 = jax.random.split(key, 5)
    params = init_params(k_p, dim_in, dim_out, ctx_dim)

    # Case 1: small, tile-aligned batch.
    B = 16
    x = jax.random.normal(k_x, (B, dim_in), jnp.float32)
    ctx = jax.random.normal(k_ctx, (B, ctx_dim), jnp.float32)
    out = jax.block_until_ready(concat_squash_linear_skip_ctx(ctx, x, params))
    ref = reference_forward(ctx, x, params)
    assert out.shape == (B, dim_out)
    assert jnp.allclose(out, ref, atol=1e-5, rtol=1e-5), "mismatch vs reference (B=16)"

    # Case 2: ragged batch exercising the padding path.
    B2 = 300
    x2 = jax.random.normal(k_x2, (B2, dim_in), jnp.float32)
    ctx2 = jax.random.normal(k_ctx2, (B2, ctx_dim), jnp.float32)
    out2 = jax.block_until_ready(concat_squash_linear_skip_ctx(ctx2, x2, params))
    ref2 = reference_forward(ctx2, x2, params)
    assert out2.shape == (B2, dim_out)
    assert jnp.allclose(out2, ref2, atol=1e-5, rtol=1e-5), "mismatch vs reference (B=300)"

    # Case 3: batch larger than one tile, exercising the multi-step grid.
    B3 = 2048 + 40
    k_x3, k_ctx3 = jax.random.split(jax.random.PRNGKey(1), 2)
    x3 = jax.random.normal(k_x3, (B3, dim_in), jnp.float32)
    ctx3 = jax.random.normal(k_ctx3, (B3, ctx_dim), jnp.float32)
    out3 = jax.block_until_ready(concat_squash_linear_skip_ctx(ctx3, x3, params))
    ref3 = reference_forward(ctx3, x3, params)
    assert out3.shape == (B3, dim_out)
    assert jnp.allclose(out3, ref3, atol=1e-5, rtol=1e-5), "mismatch vs reference (B=2088)"

    print("KERNEL_OK")
</pallas_src>

<mosaic_0001>
module attributes {stable_mosaic.version = 11 : i64} {
  func.func @concat_squash_kernel(%arg0: i32, %arg1: memref<16x32xf32, #tpu.memory_space<vmem>>, %arg2: memref<16x32xf32, #tpu.memory_space<vmem>>, %arg3: memref<32x128xf32, #tpu.memory_space<vmem>>, %arg4: memref<1x128xf32, #tpu.memory_space<vmem>>, %arg5: memref<32x64xf32, #tpu.memory_space<vmem>>, %arg6: memref<1x64xf32, #tpu.memory_space<vmem>>, %arg7: memref<64x128xf32, #tpu.memory_space<vmem>>, %arg8: memref<1x128xf32, #tpu.memory_space<vmem>>, %arg9: memref<16x64xf32, #tpu.memory_space<vmem>>) attributes {dimension_semantics = [#tpu.dimension_semantics<parallel>], iteration_bounds = array<i64: 1>, scalar_prefetch = 0 : i64, scratch_operands = 0 : i64, tpu.core_type = #tpu.core_type<tc>, window_params = [{transform_indices = @transform_0, window_bounds = array<i64: 16, 32>}, {transform_indices = @transform_1, window_bounds = array<i64: 16, 32>}, {pipeline_mode = #tpu.pipeline_mode<synchronous>, transform_indices = @transform_2, window_bounds = array<i64: 32, 128>}, {pipeline_mode = #tpu.pipeline_mode<synchronous>, transform_indices = @transform_3, window_bounds = array<i64: 1, 128>}, {pipeline_mode = #tpu.pipeline_mode<synchronous>, transform_indices = @transform_4, window_bounds = array<i64: 32, 64>}, {pipeline_mode = #tpu.pipeline_mode<synchronous>, transform_indices = @transform_5, window_bounds = array<i64: 1, 64>}, {pipeline_mode = #tpu.pipeline_mode<synchronous>, transform_indices = @transform_6, window_bounds = array<i64: 64, 128>}, {pipeline_mode = #tpu.pipeline_mode<synchronous>, transform_indices = @transform_7, window_bounds = array<i64: 1, 128>}, {transform_indices = @transform_8, window_bounds = array<i64: 16, 64>}]} {
    %c0 = arith.constant 0 : index
    %c0_0 = arith.constant 0 : index
    %0 = vector.load %arg1[%c0, %c0_0] : memref<16x32xf32, #tpu.memory_space<vmem>>, vector<16x32xf32>
    %c0_1 = arith.constant 0 : index
    %c0_2 = arith.constant 0 : index
    %1 = vector.load %arg2[%c0_1, %c0_2] : memref<16x32xf32, #tpu.memory_space<vmem>>, vector<16x32xf32>
    %2 = arith.negf %1 : vector<16x32xf32>
    %3 = math.exp %2 : vector<16x32xf32>
    %cst = arith.constant 1.000000e+00 : f32
    %4 = vector.broadcast %cst : f32 to vector<16x32xf32>
    %5 = arith.addf %4, %3 : vector<16x32xf32>
    %6 = arith.divf %4, %5 : vector<16x32xf32>
    %7 = arith.mulf %1, %6 : vector<16x32xf32>
    %c0_3 = arith.constant 0 : index
    %c0_4 = arith.constant 0 : index
    %8 = vector.load %arg5[%c0_3, %c0_4] : memref<32x64xf32, #tpu.memory_space<vmem>>, vector<32x64xf32>
    %cst_5 = arith.constant dense<0.000000e+00> : vector<16x64xf32>
    %9 = tpu.matmul %7, %8, %cst_5 {dimension_numbers = #tpu.dot_dimension_numbers<[1], [0], [0], [1], [0, 0, 1, 1], [], []>} : vector<16x32xf32>, vector<32x64xf32>, vector<16x64xf32> -> vector<16x64xf32>
    %c0_6 = arith.constant 0 : index
    %c0_7 = arith.constant 0 : index
    %10 = vector.load %arg6[%c0_6, %c0_7] : memref<1x64xf32, #tpu.memory_space<vmem>>, vector<1x64xf32>
    %11 = vector.broadcast %10 : vector<1x64xf32> to vector<16x64xf32>
    %12 = arith.addf %9, %11 : vector<16x64xf32>
    %13 = arith.negf %12 : vector<16x64xf32>
    %14 = math.exp %13 : vector<16x64xf32>
    %cst_8 = arith.constant 1.000000e+00 : f32
    %15 = vector.broadcast %cst_8 : f32 to vector<16x64xf32>
    %16 = arith.addf %15, %14 : vector<16x64xf32>
    %17 = arith.divf %15, %16 : vector<16x64xf32>
    %18 = arith.mulf %12, %17 : vector<16x64xf32>
    %c0_9 = arith.constant 0 : index
    %c0_10 = arith.constant 0 : index
    %19 = vector.load %arg7[%c0_9, %c0_10] : memref<64x128xf32, #tpu.memory_space<vmem>>, vector<64x128xf32>
    %cst_11 = arith.constant dense<0.000000e+00> : vector<16x128xf32>
    %20 = tpu.matmul %18, %19, %cst_11 {dimension_numbers = #tpu.dot_dimension_numbers<[1], [0], [0], [1], [0, 0, 1, 1], [], []>} : vector<16x64xf32>, vector<64x128xf32>, vector<16x128xf32> -> vector<16x128xf32>
    %c0_12 = arith.constant 0 : index
    %c0_13 = arith.constant 0 : index
    %21 = vector.load %arg8[%c0_12, %c0_13] : memref<1x128xf32, #tpu.memory_space<vmem>>, vector<1x128xf32>
    %22 = vector.broadcast %21 : vector<1x128xf32> to vector<16x128xf32>
    %23 = arith.addf %20, %22 : vector<16x128xf32>
    %24 = vector.extract_strided_slice %23 {offsets = [0, 0], sizes = [16, 64], strides = [1, 1]} : vector<16x128xf32> to vector<16x64xf32>
    %25 = arith.negf %24 : vector<16x64xf32>
    %26 = math.exp %25 : vector<16x64xf32>
    %cst_14 = arith.constant 1.000000e+00 : f32
    %27 = vector.broadcast %cst_14 : f32 to vector<16x64xf32>
    %28 = arith.addf %27, %26 : vector<16x64xf32>
    %29 = arith.divf %27, %28 : vector<16x64xf32>
    %30 = vector.extract_strided_slice %23 {offsets = [0, 64], sizes = [16, 64], strides = [1, 1]} : vector<16x128xf32> to vector<16x64xf32>
    %c0_15 = arith.constant 0 : index
    %c0_16 = arith.constant 0 : index
    %31 = vector.load %arg3[%c0_15, %c0_16] : memref<32x128xf32, #tpu.memory_space<vmem>>, vector<32x128xf32>
    %cst_17 = arith.constant dense<0.000000e+00> : vector<16x128xf32>
    %32 = tpu.matmul %0, %31, %cst_17 {dimension_numbers = #tpu.dot_dimension_numbers<[1], [0], [0], [1], [0, 0, 1, 1], [], []>} : vector<16x32xf32>, vector<32x128xf32>, vector<16x128xf32> -> vector<16x128xf32>
    %c0_18 = arith.constant 0 : index
    %c0_19 = arith.constant 0 : index
    %33 = vector.load %arg4[%c0_18, %c0_19] : memref<1x128xf32, #tpu.memory_space<vmem>>, vector<1x128xf32>
    %34 = vector.broadcast %33 : vector<1x128xf32> to vector<16x128xf32>
    %35 = arith.addf %32, %34 : vector<16x128xf32>
    %36 = vector.extract_strided_slice %35 {offsets = [0, 0], sizes = [16, 64], strides = [1, 1]} : vector<16x128xf32> to vector<16x64xf32>
    %37 = vector.extract_strided_slice %35 {offsets = [0, 64], sizes = [16, 64], strides = [1, 1]} : vector<16x128xf32> to vector<16x64xf32>
    %38 = arith.mulf %36, %29 : vector<16x64xf32>
    %39 = arith.addf %38, %30 : vector<16x64xf32>
    %40 = arith.addf %39, %37 : vector<16x64xf32>
    %c0_20 = arith.constant 0 : index
    %c0_21 = arith.constant 0 : index
    %41 = vector.load %arg9[%c0_20, %c0_21] : memref<16x64xf32, #tpu.memory_space<vmem>>, vector<16x64xf32>
    tpu.vector_store %arg9[%c0_20, %c0_21], %40 {strides = array<i32>} : memref<16x64xf32, #tpu.memory_space<vmem>>, vector<16x64xf32>,
    return
  }
  func.func @transform_0(%arg0: i32) -> (i32, i32) {
    %c0_i32 = arith.constant 0 : i32
    %c0_i32_0 = arith.constant 0 : i32
    return %arg0, %c0_i32 : i32, i32
  }
  func.func @transform_1(%arg0: i32) -> (i32, i32) {
    %c0_i32 = arith.constant 0 : i32
    %c0_i32_0 = arith.constant 0 : i32
    return %arg0, %c0_i32 : i32, i32
  }
  func.func @transform_2(%arg0: i32) -> (i32, i32) {
    %c0_i32 = arith.constant 0 : i32
    %c0_i32_0 = arith.constant 0 : i32
    %c0_i32_1 = arith.constant 0 : i32
    return %c0_i32, %c0_i32_0 : i32, i32
  }
  func.func @transform_3(%arg0: i32) -> (i32, i32) {
    %c0_i32 = arith.constant 0 : i32
    %c0_i32_0 = arith.constant 0 : i32
    %c0_i32_1 = arith.constant 0 : i32
    return %c0_i32, %c0_i32_0 : i32, i32
  }
  func.func @transform_4(%arg0: i32) -> (i32, i32) {
    %c0_i32 = arith.constant 0 : i32
    %c0_i32_0 = arith.constant 0 : i32
    %c0_i32_1 = arith.constant 0 : i32
    return %c0_i32, %c0_i32_0 : i32, i32
  }
  func.func @transform_5(%arg0: i32) -> (i32, i32) {
    %c0_i32 = arith.constant 0 : i32
    %c0_i32_0 = arith.constant 0 : i32
    %c0_i32_1 = arith.constant 0 : i32
    return %c0_i32, %c0_i32_0 : i32, i32
  }
  func.func @transform_6(%arg0: i32) -> (i32, i32) {
    %c0_i32 = arith.constant 0 : i32
    %c0_i32_0 = arith.constant 0 : i32
    %c0_i32_1 = arith.constant 0 : i32
    return %c0_i32, %c0_i32_0 : i32, i32
  }
  func.func @transform_7(%arg0: i32) -> (i32, i32) {
    %c0_i32 = arith.constant 0 : i32
    %c0_i32_0 = arith.constant 0 : i32
    %c0_i32_1 = arith.constant 0 : i32
    return %c0_i32, %c0_i32_0 : i32, i32
  }
  func.func @transform_8(%arg0: i32) -> (i32, i32) {
    %c0_i32 = arith.constant 0 : i32
    %c0_i32_0 = arith.constant 0 : i32
    return %arg0, %c0_i32 : i32, i32
  }
}

</mosaic_0001>

<bundles_post_ra>
// kernel: tpu_custom_call.1
= control target key start
LH: loop header
LB: loop body
LE: loop exit
PB: predicated region body
PF: predicated region fallthrough
CT: control target
= control target key end

     0   :  { %13 = vsyncpa [#allocation3], 0  ;;  %s813_s0 = inlined_call_operand.hbm [shape: f32[16,32], index: 0, kind: input, shape index: {}]   ;;  %s814_s1 = inlined_call_operand.hbm [shape: f32[16,32], index: 1, kind: input, shape index: {}]   ;;  %s815_s2 = inlined_call_operand.hbm [shape: f32[32,128], index: 2, kind: input, shape index: {}]   ;;  %s816_s3 = inlined_call_operand.vmem [shape: f32[1,128], index: 3, kind: input, shape index: {}]   ;;  %s817_s4 = inlined_call_operand.hbm [shape: f32[32,64], index: 4, kind: input, shape index: {}]   ;;  %s818_s5 = inlined_call_operand.vmem [shape: f32[1,64], index: 5, kind: input, shape index: {}]   ;;  %s819_s6 = inlined_call_operand.hbm [shape: f32[64,128], index: 6, kind: input, shape index: {}]   ;;  %s820_s7 = inlined_call_operand.vmem [shape: f32[1,128], index: 7, kind: input, shape index: {}]   ;;  %s821_s8 = inlined_call_operand.hbm [shape: f32[16,64], index: 8, kind: output, shape index: {}]  }
   0x1   :  { %14 = vsyncpa [#allocation6], 0 }
   0x2   :  { %15 = vsyncpa [#allocation9], 0 }
   0x3   :  { %16 = vsyncpa [#allocation4], 0  ;;  %s706_s27 = smov [#allocation5]   ;;  %s707_s29 = smov [#allocation8]  }
   0x4   :  { %s34_s28 = sshll.u32 %s706_s27, 4  ;;  %s60_s30 = sshll.u32 %s707_s29, 4  ;;  %s35_s28 = int_to_ptr.vmem [resolvable:$true] %s34_s28  ;;  %s61_s30 = int_to_ptr.vmem [resolvable:$true] %s60_s30 }
   0x5   :  { %s586_s9 = scalar_lea.vmem %s35_s28, 256  ;;  %p591_p1 = scmp.lt.s32.totalorder %s35_s28, %s35_s28 }
   0x6   :  { %p587_p0 = scmp.ne.s32.totalorder %s35_s28, %s586_s9  ;;  %p592_p2 = scmp.lt.s32.totalorder %s586_s9, %s586_s9 }
   0x8   :  { %p593_p3 = por %p592_p2, %p591_p1 }
   0xa   :  { %p594_p4 = pnand %p593_p3, %p587_p0 }
   0xc   :  { %597 = shalt.err (!%p594_p4)
}
   0xd   :  { %s708_s10 = smov 128   ;;  %s709_s11 = smov 8  }
   0xe   :  { %40 = dma.hbm_to_vmem [thread:$0]  %s814_s1, 256, %s35_s28, [#allocation6], %s708_s10, %s708_s10, %s709_s11  }
   0xf   :  { %s606_s14 = scalar_lea.vmem %s61_s30, 512  ;;  %p611_p6 = scmp.lt.s32.totalorder %s61_s30, %s61_s30 }
  0x10   :  { %p607_p5 = scmp.ne.s32.totalorder %s61_s30, %s606_s14  ;;  %p612_p7 = scmp.lt.s32.totalorder %s606_s14, %s606_s14 }
  0x12   :  { %p613_p8 = por %p612_p7, %p611_p6 }
  0x14   :  { %p614_p9 = pnand %p613_p8, %p607_p5 }
  0x16   :  { %617 = shalt.err (!%p614_p9)
}
  0x17   :  { %66 = dma.hbm_to_vmem [thread:$0]  %s817_s4, 512, %s61_s30, [#allocation9], %s708_s10, %s708_s10, %s709_s11  }
  0x18   :  { %s710_s17 = smov [#allocation2]   ;;  %s711_s19 = smov [#allocation7]  }
  0x19   :  { %s22_s18 = sshll.u32 %s710_s17, 4  ;;  %s46_s20 = sshll.u32 %s711_s19, 4  ;;  %s23_s18 = int_to_ptr.vmem [resolvable:$true] %s22_s18  ;;  %s47_s20 = int_to_ptr.vmem [resolvable:$true] %s46_s20 }
  0x1a   :  { %s626_s1 = scalar_lea.vmem %s23_s18, 256  ;;  %p631_p11 = scmp.lt.s32.totalorder %s23_s18, %s23_s18 }
  0x1b   :  { %p627_p10 = scmp.ne.s32.totalorder %s23_s18, %s626_s1  ;;  %p632_p12 = scmp.lt.s32.totalorder %s626_s1, %s626_s1 }
  0x1d   :  { %p633_p13 = por %p632_p12, %p631_p11 }
  0x1f   :  { %p634_p0 = pnand %p633_p13, %p627_p10 }
  0x21   :  { %637 = shalt.err (!%p634_p0)
}
  0x22   :  { %28 = dma.hbm_to_vmem [thread:$0]  %s813_s0, 256, %s23_s18, [#allocation3], %s708_s10, %s708_s10, %s709_s11  }
  0x23   :  { %s646_s4 = scalar_lea.vmem %s47_s20, 512  ;;  %p651_p2 = scmp.lt.s32.totalorder %s47_s20, %s47_s20 }
  0x24   :  { %p647_p1 = scmp.ne.s32.totalorder %s47_s20, %s646_s4  ;;  %p652_p3 = scmp.lt.s32.totalorder %s646_s4, %s646_s4 }
  0x26   :  { %p653_p4 = por %p652_p3, %p651_p2 }
  0x28   :  { %p654_p5 = pnand %p653_p4, %p647_p1 }
  0x2a   :  { %657 = shalt.err (!%p654_p5)
}
  0x2b   :  { %52 = dma.hbm_to_vmem [thread:$0]  %s815_s2, 512, %s47_s20, [#allocation6], %s708_s10, %s708_s10, %s709_s11  }
  0x2c   :  { %s712_s25 = smov [#allocation10]  }
  0x2d   :  { %s74_s26 = sshll.u32 %s712_s25, 4  ;;  %s75_s26 = int_to_ptr.vmem [resolvable:$true] %s74_s26 }
  0x2e   :  { %s666_s27 = scalar_lea.vmem %s75_s26, 1024  ;;  %p671_p7 = scmp.lt.s32.totalorder %s75_s26, %s75_s26 }
  0x2f   :  { %p667_p6 = scmp.ne.s32.totalorder %s75_s26, %s666_s27  ;;  %p672_p8 = scmp.lt.s32.totalorder %s666_s27, %s666_s27 }
  0x31   :  { %p673_p9 = por %p672_p8, %p671_p7 }
  0x33   :  { %p674_p10 = pnand %p673_p9, %p667_p6 }
  0x35   :  { %677 = shalt.err (!%p674_p10)
}
  0x36   :  { %80 = dma.hbm_to_vmem [thread:$0]  %s819_s6, 1024, %s75_s26, [#allocation9], %s708_s10, %s708_s10, %s709_s11  }
  0x37   :  { %698 = dma.done.wait [#allocation3], 256  }
  0x38   :  { %699 = vsyncadd [#allocation3], 4294967040 }
  0x39   :  { %700 = dma.done.wait [#allocation6], 768  }
  0x3a   :  { %701 = vsyncadd [#allocation6], 4294966528 }
  0x3b   :  { %702 = dma.done.wait [#allocation9], 1536  }
  0x3c   :  { %703 = vsyncadd [#allocation9], 4294965760  ;;  %v119_v0 = vld [vmem:[#allocation8 + $0x18] sm:$0xff]  ;;  %v118_v1 = vld [vmem:[#allocation8 + $0x10] sm:$0xff]  ;;  %vm127_vm0 = vcmask 261120   ;;  %vm238_vm1 = vcmask 523264  }
  0x3d   :  { %504 = vmatprep.subr.mxu0 %v119_v0  ;;  %v100_v2 = vld [vmem:[#allocation5] sm:$0xff]  ;;  %v101_v3 = vld [vmem:[#allocation5 + $0x8] sm:$0xff]  ;;  %v117_v4 = vld [vmem:[#allocation8 + $0x8] sm:$0xff]  ;;  %s713_s30 = smov 64  }
  0x3e   :  { %505 = vmatpush3.msra.mxu0 %v119_v0  ;;  %v467_v5 = vmul.f32 -1.442695, %v100_v2  ;;  %v468_v6 = vmul.f32 -1.442695, %v101_v3  ;;  %v116_v7 = vld [vmem:[#allocation8] sm:$0xff]  ;;  %v230_v16 = vld [vmem:[#allocation10 + $0x38] sm:$0xff] }
  0x3f   :  { %506 = vmatprep.subr.mxu0 %v118_v1  ;;  %515 = vmatprep.subr.mxu1 %v230_v16  ;;  %v229_v17 = vld [vmem:[#allocation10 + $0x30] sm:$0xff]  ;;  %v228_v18 = vld [vmem:[#allocation10 + $0x28] sm:$0xff]  ;;  %v335_v19 = vld [vmem:[#allocation7 + $0x18] sm:$0xff] }
  0x40   :  { %507 = vmatpush3.msra.mxu0 %v118_v1  ;;  %554 = vpow2.f32 %v467_v5  ;;  %516 = vmatpush3.msra.mxu1 %v230_v16  ;;  %v227_v20 = vld [vmem:[#allocation10 + $0x20] sm:$0xff]  ;;  %v334_v21 = vld [vmem:[#allocation7 + $0x10] sm:$0xff]  ;;  %v226_v22 = vld [vmem:[#allocation10 + $0x18] sm:$0xff] }
  0x41   :  { %508 = vmatprep.subr.mxu0 %v117_v4  ;;  %556 = vpow2.f32 %v468_v6  ;;  %517 = vmatprep.subr.mxu1 %v229_v17  ;;  %v333_v23 = vld [vmem:[#allocation7 + $0x8] sm:$0xff]  ;;  %v225_v24 = vld [vmem:[#allocation10 + $0x10] sm:$0xff]  ;;  %v332_v25 = vld [vmem:[#allocation7] sm:$0xff] }
  0x42   :  { %509 = vmatpush3.msra.mxu0 %v117_v4  ;;  %518 = vmatpush3.msra.mxu1 %v229_v17  ;;  %v98_v26 = vld [vmem:[#allocation2] sm:$0xff]  ;;  %v224_v27 = vld [vmem:[#allocation10 + $0x8] sm:$0xff] }
  0x43   :  { %510 = vmatprep.subr.mxu0 %v116_v7  ;;  %519 = vmatprep.subr.mxu1 %v228_v18  ;;  %v99_v28 = vld [vmem:[#allocation2 + $0x8] sm:$0xff]  ;;  %v223_v29 = vld [vmem:[#allocation10] sm:$0xff] }
  0x44   :  { %511 = vmatpush3.msra.mxu0 %v116_v7  ;;  %520 = vmatpush3.msra.mxu1 %v228_v18  ;;  %v469_v30 = vld [vmem:[%s818_s5] ss:$0 sm:$0xff] }
  0x45   :  { %534 = vmatprep.subr.mxu0 %v335_v19  ;;  %521 = vmatprep.subr.mxu1 %v227_v20  ;;  %v479_v46 = vld [vmem:[%s816_s3] ss:$0 sm:$0xff]  ;;  %s714_s3 = smov [#allocation11]  }
  0x46   :  { %522 = vmatpush3.msra.mxu1 %v227_v20  ;;  %v474_v51 = vld [vmem:[%s820_s7] ss:$0 sm:$0xff]  ;;  %s453_s7 = sshll.u32 %s714_s3, 4  ;;  %s454_s7 = int_to_ptr.vmem [resolvable:$true] %s453_s7 }
  0x47   :  { %523 = vmatprep.subr.mxu1 %v226_v22  ;;  %s678_s13 = scalar_lea.vmem %s454_s7, 256  ;;  %p683_p12 = scmp.lt.s32.totalorder %s454_s7, %s454_s7 }
  0x48   :  { %524 = vmatpush3.msra.mxu1 %v226_v22  ;;  %p679_p11 = scmp.ne.s32.totalorder %s454_s7, %s678_s13  ;;  %p684_p13 = scmp.lt.s32.totalorder %s678_s13, %s678_s13 }
  0x49   :  { %525 = vmatprep.subr.mxu1 %v225_v24 }
  0x4a   :  { %526 = vmatpush3.msra.mxu1 %v225_v24  ;;  %p685_p0 = por %p684_p13, %p683_p12 }
  0x4b   :  { %527 = vmatprep.subr.mxu1 %v224_v27 }
  0x4c   :  { %528 = vmatpush3.msra.mxu1 %v224_v27  ;;  %p686_p1 = pnand %p685_p0, %p679_p11 }
  0x4d   :  { %v555_v8 = vpop.eup %554  ;;  %529 = vmatprep.subr.mxu1 %v223_v29 }
  0x4e   :  { %v557_v9 = vpop.eup %556  ;;  %v108_v10 = vadd.f32 1.0, %v555_v8  ;;  %530 = vmatpush3.msra.mxu1 %v223_v29 }
  0x4f   :  { %v109_v11 = vadd.f32 1.0, %v557_v9 }
  0x50   :  { %558 = vrcp.f32 %v108_v10 }
  0x51   :  { %560 = vrcp.f32 %v109_v11 }
  0x5d   :  { %v559_v12 = vpop.eup %558 }
  0x5e   :  { %v561_v13 = vpop.eup %560  ;;  %v114_v14 = vmul.f32 %v559_v12, %v100_v2 }
  0x5f   :  { %v115_v15 = vmul.f32 %v561_v13, %v101_v3 }
  0x60   :  { %512 = vmatprep.mubr.msk.f32.mxu0 %vm127_vm0, %v114_v14 }
  0x61   :  { %513 = vmatmul.mubr.msk.f32.vlgmr.msra.gmra.mxu0 %vm127_vm0, %v115_v15 }
  0x62   :  { %535 = vmatpush3.msra.mxu0 %v335_v19  ;;  %542 = vmatprep.mubr.msk.f32.mxu0 %vm127_vm0, %v98_v26 }
  0x63   :  { %536 = vmatprep.subr.mxu0 %v334_v21 }
  0x64   :  { %537 = vmatpush3.msra.mxu0 %v334_v21 }
  0x65   :  { %538 = vmatprep.subr.mxu0 %v333_v23 }
  0x66   :  { %539 = vmatpush3.msra.mxu0 %v333_v23 }
  0x67   :  { %540 = vmatprep.subr.mxu0 %v332_v25 }
  0x68   :  { %541 = vmatpush3.msra.mxu0 %v332_v25 }
  0x69   :  { %543 = vmatmul.mubr.msk.f32.vlgmr.msra.gmra.mxu0 %vm127_vm0, %v99_v28 }
 0x121   :  { %v514_v31 = vpop.f32.mrf.mxu0 }
 0x122   :  { %v206_v32 = vadd.f32 %v514_v31, %v469_v30 }
 0x123   :  { %v200_v33 = vpop.f32.mrf.mxu0 }
 0x124   :  { %v473_v34 = vmul.f32 -1.442695, %v206_v32  ;;  %v201_v35 = vadd.f32 %v469_v30, %v200_v33 }
 0x126   :  { %562 = vpow2.f32 %v473_v34  ;;  %v472_v36 = vmul.f32 -1.442695, %v201_v35 }
 0x128   :  { %564 = vpow2.f32 %v472_v36 }
 0x129   :  { %v544_v45 = vpop.f32.mrf.mxu0 }
 0x12a   :  { %v421_v49 = vadd.f32 %v544_v45, %v479_v46 }
 0x12b   :  { %v415_v47 = vpop.f32.mrf.mxu0 }
 0x12c   :  { %v416_v48 = vadd.f32 %v479_v46, %v415_v47 }
 0x12e   :  { %438 = vrot.lane.b32.xlu1 %v416_v48, %s713_s30 }
 0x132   :  { %440 = vrot.lane.b32.xlu1 %v421_v49, %s713_s30 }
 0x133   :  { %v563_v37 = vpop.eup %562 }
 0x134   :  { %v216_v38 = vadd.f32 1.0, %v563_v37 }
 0x135   :  { %v565_v39 = vpop.eup %564 }
 0x136   :  { %v215_v40 = vadd.f32 1.0, %v565_v39  ;;  %566 = vrcp.f32 %v216_v38 }
 0x138   :  { %568 = vrcp.f32 %v215_v40 }
 0x143   :  { %v567_v41 = vpop.eup %566 }
 0x144   :  { %v222_v44 = vmul.f32 %v567_v41, %v206_v32 }
 0x145   :  { %v569_v42 = vpop.eup %568 }
 0x146   :  { %v221_v43 = vmul.f32 %v569_v42, %v201_v35 }
 0x148   :  { %531 = vmatprep.mubr.msk.f32.mxu1 %vm238_vm1, %v221_v43 }
 0x149   :  { %532 = vmatmul.mubr.msk.f32.vlgmr.msra.gmra.mxu1 %vm238_vm1, %v222_v44 }
 0x1a0   :  { %v439_v0 = vpop.permute.xlu1 %438 }
 0x1a4   :  { %v441_v7 = vpop.permute.xlu1 %440 }
 0x209   :  { %v533_v50 = vpop.f32.mrf.mxu1 }
 0x20a   :  { %v317_v54 = vadd.f32 %v533_v50, %v474_v51 }
 0x20b   :  { %v311_v52 = vpop.f32.mrf.mxu1 }
 0x20c   :  { %v312_v53 = vadd.f32 %v474_v51, %v311_v52  ;;  %v478_v56 = vmul.f32 -1.442695, %v317_v54 }
 0x20e   :  { %428 = vrot.lane.b32.xlu0 %v312_v53, %s713_s30  ;;  %v477_v55 = vmul.f32 -1.442695, %v312_v53 }
 0x210   :  { %570 = vpow2.f32 %v477_v55 }
 0x211   :  { %572 = vpow2.f32 %v478_v56 }
 0x212   :  { %430 = vrot.lane.b32.xlu0 %v317_v54, %s713_s30 }
 0x21d   :  { %v571_v57 = vpop.eup %570 }
 0x21e   :  { %v326_v58 = vadd.f32 1.0, %v571_v57  ;;  %v573_v59 = vpop.eup %572 }
 0x21f   :  { %v327_v60 = vadd.f32 1.0, %v573_v59 }
 0x220   :  { %574 = vrcp.f32 %v326_v58 }
 0x221   :  { %576 = vrcp.f32 %v327_v60 }
 0x22d   :  { %v575_v61 = vpop.eup %574 }
 0x22e   :  { %v424_v62 = vmul.f32 %v575_v61, %v416_v48  ;;  %v577_v63 = vpop.eup %576 }
 0x22f   :  { %v425_v4 = vmul.f32 %v577_v63, %v421_v49 }
 0x280   :  { %v429_v1 = vpop.permute.xlu0 %428 }
 0x281   :  { %v434_v2 = vadd.f32 %v429_v1, %v424_v62 }
 0x283   :  { %v444_v3 = vadd.f32 %v439_v0, %v434_v2 }
 0x284   :  { %v431_v5 = vpop.permute.xlu0 %430 }
 0x285   :  { %446 = vst.msk [vmem:[#allocation11] sm:$0xff] %vm238_vm1, %v444_v3  ;;  %v435_v6 = vadd.f32 %v431_v5, %v425_v4 }
 0x287   :  { %v445_v8 = vadd.f32 %v441_v7, %v435_v6 }
 0x289   :  { %447 = vst.msk [vmem:[#allocation11 + $0x8] sm:$0xff] %vm238_vm1, %v445_v8 }
 0x28a   :  { %689 = shalt.err (!%p686_p1)
}
 0x28b   :  { %459 = dma.vmem_to_hbm [thread:$0]  %s454_s7, 256, %s821_s8, [#allocation4], %s708_s10, %s708_s10, %s709_s11  }
 0x28c   :  { %704 = dma.done.wait [#allocation4], 256  }
 0x28d   :  { %705 = vsyncadd [#allocation4], 4294967040 }
 0x28e   :  { %463 = vsyncpa [#allocation3], 1 }
 0x28f   :  { %464 = vsyncpa [#allocation6], 1 }
 0x290   :  { %465 = vsyncpa [#allocation9], 1 }
 0x291   :  { %466 = vsyncpa [#allocation4], 1 }

</bundles_post_ra>
